<compile_context>
chip_gen: v7x
topology: tpu7x:2x2x1
jax: 0.10.0
libtpu: 0.0.40
codegen_flags: <defaults>
</compile_context>

<pallas_src>
import math

import jax
import jax.numpy as jnp
from jax import lax
from jax.experimental import pallas as pl
from jax.experimental.pallas import tpu as pltpu


# ---------------------------------------------------------------------------
# Kernel
# ---------------------------------------------------------------------------
def _basic_block_kernel(x_ref, t1_ref, b1_ref, t2_ref, b2_ref, out_ref,
                        xpad_ref, hpad_ref):
    # x_ref  : (1, H, L_in)       bf16  G-packed row-flattened input (also residual)
    # t1_ref : (3, L_in,  L_out)  bf16  block-diag banded conv1 weights, BN1 scale folded in
    # b1_ref : (1, L_out)         f32   folded BN1 bias (tiled over g,w)
    # t2_ref : (3, L_out, L_out)  bf16  block-diag banded conv2 weights, BN2 scale folded in
    # b2_ref : (1, L_out)         f32   folded BN2 bias
    # out_ref: (1, H, L_out)      bf16
    # xpad_ref: (H+2, L_in)  bf16 VMEM scratch: height-padded input
    # hpad_ref: (H+2, L_out) bf16 VMEM scratch: height-padded intermediate
    H = out_ref.shape[1]
    l_in = x_ref.shape[2]
    l_out = out_ref.shape[2]

    x2 = x_ref[0]                                     # (H, L_in) bf16

    # Height-pad the input into scratch.  Only the two 1-row borders are
    # zeroed (interior fully overwritten each step), so there is no
    # cross-iteration scratch state and the grid axis is megacore-safe.
    xpad_ref[0:1, :] = jnp.zeros((1, l_in), jnp.bfloat16)
    xpad_ref[H + 1:H + 2, :] = jnp.zeros((1, l_in), jnp.bfloat16)
    xpad_ref[1:H + 1, :] = x2

    def conv_bias(pad_ref, t_ref, b_ref):
        # 3x3 conv (pad=1, stride=1) as 3 accumulated lane-dense matmuls, one
        # per vertical shift dy.  Horizontal taps, width zero-padding and the
        # BN scale all live in the banded weight slabs.  Operands are sliced
        # directly off the ref (no materialized padded value).
        acc = jnp.dot(pad_ref[0:H, :], t_ref[0],
                      preferred_element_type=jnp.float32)
        acc = acc + jnp.dot(pad_ref[1:H + 1, :], t_ref[1],
                            preferred_element_type=jnp.float32)
        acc = acc + jnp.dot(pad_ref[2:H + 2, :], t_ref[2],
                            preferred_element_type=jnp.float32)
        return acc + b_ref[...]                        # folded BN bias, f32

    # conv1 -> bn1 -> relu
    h = jnp.maximum(conv_bias(xpad_ref, t1_ref, b1_ref), 0.0)

    # height-pad intermediate (bf16 for the second MXU pass)
    hpad_ref[0:1, :] = jnp.zeros((1, l_out), jnp.bfloat16)
    hpad_ref[H + 1:H + 2, :] = jnp.zeros((1, l_out), jnp.bfloat16)
    hpad_ref[1:H + 1, :] = h.astype(jnp.bfloat16)

    # conv2 -> bn2 -> + residual -> relu
    o = conv_bias(hpad_ref, t2_ref, b2_ref)
    o = o + x2.astype(jnp.float32)                     # residual reuse (Cin == Cout)
    o = jnp.maximum(o, 0.0)
    out_ref[...] = o.astype(jnp.bfloat16)[None, :, :]


# ---------------------------------------------------------------------------
# Host-side (one-time) weight folding
# ---------------------------------------------------------------------------
def _fold_conv3x3_banded(wk, W):
    """HWIO (3,3,Cin,Cout) -> (3, W*Cin, W*Cout) banded weight slabs.

    Slab dy satisfies:  T[dy][(w+dx-1)*Cin + ci, w*Cout + co] = wk[dy,dx,ci,co]
    for valid 0 <= w+dx-1 < W (width zero-padding folded in as missing taps).
    """
    r = jnp.arange(W)
    # band[dx, r, w] = 1 iff r == w + dx - 1
    band = (r[None, :, None] == (r[None, None, :]
                                 + jnp.arange(3)[:, None, None] - 1))
    band = band.astype(wk.dtype)                        # (3, W, W)
    t = jnp.einsum('yxio,xrw->yriwo', wk, band)         # (3, W, Cin, W, Cout)
    _, _, cin, _, cout = t.shape
    return t.reshape(3, W * cin, W * cout)


def _pick_group(N, WC, lane_target=128):
    """Images packed side-by-side on the lane axis (must divide N)."""
    g = max(1, lane_target // max(WC, 1))
    g = math.gcd(N, g)
    return max(g, 1)


def fold_basic_block_params(params, W, G, eps=1e-5):
    """Precompute folded tensors (call once per weight update, not per forward)."""
    (w1, g1, be1, m1, v1, w2, g2, be2, m2, v2) = params
    cin, cout = w1.shape[2], w1.shape[3]
    assert cin == cout, "downsample=None requires inplanes == planes"

    inv1 = g1 / jnp.sqrt(v1 + eps)
    inv2 = g2 / jnp.sqrt(v2 + eps)

    # Fold BN scale into the conv output channels (exact: conv is linear).
    w1s = w1 * inv1[None, None, None, :]
    w2s = w2 * inv2[None, None, None, :]

    t1 = _fold_conv3x3_banded(w1s, W)                   # (3, W*Cin,  W*Cout) f32
    t2 = _fold_conv3x3_banded(w2s, W)                   # (3, W*Cout, W*Cout) f32

    # Block-diagonal over the G packed images so images never mix.
    eye_g = jnp.eye(G, dtype=t1.dtype)
    t1g = jnp.einsum('gh,dkc->dgkhc', eye_g, t1)
    t1g = t1g.reshape(3, G * W * cin, G * W * cout).astype(jnp.bfloat16)
    t2g = jnp.einsum('gh,dkc->dgkhc', eye_g, t2)
    t2g = t2g.reshape(3, G * W * cout, G * W * cout).astype(jnp.bfloat16)

    b1 = jnp.tile((be1 - m1 * inv1).reshape(1, cout), (1, G * W)).astype(jnp.float32)
    b2 = jnp.tile((be2 - m2 * inv2).reshape(1, cout), (1, G * W)).astype(jnp.float32)
    return t1g, b1, t2g, b2


# ---------------------------------------------------------------------------
# Forward wrapper
# ---------------------------------------------------------------------------
@jax.jit
def basic_block_pallas(x_nchw, t1g, b1, t2g, b2):
    """Forward of BasicBlock. x_nchw: (N, C, H, W) float32 (PyTorch layout)."""
    N, Cin, H, W = x_nchw.shape
    Cout = Cin
    l_in = t1g.shape[1]
    l_out = t1g.shape[2]
    G = l_in // (W * Cin)
    NG = N // G

    # NCHW -> NHWC (bf16) -> pack G images side-by-side on the lane axis:
    # packed[ng, h, g*W*C + w*C + c] = x[ng*G + g, h, w, c]
    x = jnp.transpose(x_nchw, (0, 2, 3, 1)).astype(jnp.bfloat16)
    x = x.reshape(NG, G, H, W * Cin).transpose(0, 2, 1, 3).reshape(NG, H, l_in)

    out = pl.pallas_call(
        _basic_block_kernel,
        out_shape=jax.ShapeDtypeStruct((NG, H, l_out), jnp.bfloat16),
        grid_spec=pltpu.PrefetchScalarGridSpec(
            num_scalar_prefetch=0,
            grid=(NG,),
            in_specs=[
                pl.BlockSpec((1, H, l_in), lambda n: (n, 0, 0)),
                pl.BlockSpec((3, l_in, l_out), lambda n: (0, 0, 0)),
                pl.BlockSpec((1, l_out), lambda n: (0, 0)),
                pl.BlockSpec((3, l_out, l_out), lambda n: (0, 0, 0)),
                pl.BlockSpec((1, l_out), lambda n: (0, 0)),
            ],
            out_specs=pl.BlockSpec((1, H, l_out), lambda n: (n, 0, 0)),
            scratch_shapes=[
                pltpu.VMEM((H + 2, l_in), jnp.bfloat16),
                pltpu.VMEM((H + 2, l_out), jnp.bfloat16),
            ],
        ),
        compiler_params=pltpu.CompilerParams(
            dimension_semantics=("parallel",),
            vmem_limit_bytes=32 * 1024 * 1024),
    )(x, t1g, b1, t2g, b2)

    # Unpack lanes and relayout to NCHW while still bf16; cast to f32 last.
    out = out.reshape(NG, H, G, W, Cout).transpose(0, 2, 4, 1, 3)
    out = out.reshape(N, Cout, H, W)
    return out.astype(jnp.float32)


# ---------------------------------------------------------------------------
# Reference (quantization-matched pure JAX) + test harness
# ---------------------------------------------------------------------------
def basic_block_reference(x_nchw, params, eps=1e-5):
    """Reference matching the kernel's quantization points (bf16 in, f32 acc)."""
    (w1, g1, be1, m1, v1, w2, g2, be2, m2, v2) = params
    inv1 = g1 / jnp.sqrt(v1 + eps)
    inv2 = g2 / jnp.sqrt(v2 + eps)
    w1s = (w1 * inv1[None, None, None, :]).astype(jnp.bfloat16)
    w2s = (w2 * inv2[None, None, None, :]).astype(jnp.bfloat16)
    b1 = be1 - m1 * inv1
    b2 = be2 - m2 * inv2

    x = jnp.transpose(x_nchw, (0, 2, 3, 1)).astype(jnp.bfloat16)
    dn = lax.conv_dimension_numbers(x.shape, w1s.shape, ("NHWC", "HWIO", "NHWC"))

    h = lax.conv_general_dilated(x, w1s, (1, 1), ((1, 1), (1, 1)),
                                 dimension_numbers=dn,
                                 preferred_element_type=jnp.float32)
    h = jnp.maximum(h + b1, 0.0).astype(jnp.bfloat16)
    o = lax.conv_general_dilated(h, w2s, (1, 1), ((1, 1), (1, 1)),
                                 dimension_numbers=dn,
                                 preferred_element_type=jnp.float32)
    o = jnp.maximum(o + b2 + x.astype(jnp.float32), 0.0)
    return jnp.transpose(o, (0, 3, 1, 2))


def init_params(key, inplanes, planes):
    ks = jax.random.split(key, 8)
    # conv weights stored HWIO (3,3,Cin,Cout); no bias (matches conv3x3)
    w1 = jax.random.normal(ks[0], (3, 3, inplanes, planes), jnp.float32) * 0.1
    w2 = jax.random.normal(ks[1], (3, 3, planes, planes), jnp.float32) * 0.1
    g1 = jax.random.uniform(ks[2], (planes,), jnp.float32, 0.5, 1.5)
    be1 = jax.random.normal(ks[3], (planes,), jnp.float32) * 0.1
    m1 = jax.random.normal(ks[4], (planes,), jnp.float32) * 0.1
    v1 = jax.random.uniform(ks[5], (planes,), jnp.float32, 0.5, 1.5)
    g2 = jax.random.uniform(ks[6], (planes,), jnp.float32, 0.5, 1.5)
    be2 = jax.random.normal(ks[7], (planes,), jnp.float32) * 0.1
    m2 = jnp.zeros((planes,), jnp.float32)
    v2 = jnp.ones((planes,), jnp.float32)
    return (w1, g1, be1, m1, v1, w2, g2, be2, m2, v2)


if __name__ == "__main__":
    key = jax.random.PRNGKey(0)
    kx, kp = jax.random.split(key)

    N, C, H, W = 2, 4, 16, 16
    x = jax.random.normal(kx, (N, C, H, W), jnp.float32)
    params = init_params(kp, inplanes=C, planes=C)

    # One-time weight/BN folding (hoisted out of the per-call forward path).
    G = _pick_group(N, W * C, lane_target=128)          # -> 2 for this shape
    folded = fold_basic_block_params(params, W=W, G=G)
    folded = jax.block_until_ready(folded)

    out = basic_block_pallas(x, *folded)
    out = jax.block_until_ready(out)

    ref = basic_block_reference(x, params)

    assert out.shape == (N, C, H, W)
    max_err = float(jnp.max(jnp.abs(out - ref)))
    # bf16 activations/weights feed the MXU (and the kernel emits bf16), so
    # numerics differ from true-fp32 PyTorch at ~1e-2 scale; acceptable for
    # inference.
    assert jnp.allclose(out, ref, rtol=2e-2, atol=2e-2), max_err

    print("KERNEL_OK")
</pallas_src>

<mosaic_0001>
module attributes {stable_mosaic.version = 11 : i64} {
  func.func @_basic_block_kernel(%arg0: i32, %arg1: memref<1x16x128xbf16, #tpu.memory_space<vmem>>, %arg2: memref<3x128x128xbf16, #tpu.memory_space<vmem>>, %arg3: memref<1x128xf32, #tpu.memory_space<vmem>>, %arg4: memref<3x128x128xbf16, #tpu.memory_space<vmem>>, %arg5: memref<1x128xf32, #tpu.memory_space<vmem>>, %arg6: memref<1x16x128xbf16, #tpu.memory_space<vmem>>, %arg7: memref<18x128xbf16, #tpu.memory_space<vmem>>, %arg8: memref<18x128xbf16, #tpu.memory_space<vmem>>) attributes {dimension_semantics = [#tpu.dimension_semantics<parallel>], iteration_bounds = array<i64: 1>, scalar_prefetch = 0 : i64, scratch_operands = 2 : i64, tpu.core_type = #tpu.core_type<tc>, window_params = [{transform_indices = @transform_0, window_bounds = array<i64: 1, 16, 128>}, {pipeline_mode = #tpu.pipeline_mode<synchronous>, transform_indices = @transform_1, window_bounds = array<i64: 3, 128, 128>}, {pipeline_mode = #tpu.pipeline_mode<synchronous>, transform_indices = @transform_2, window_bounds = array<i64: 1, 128>}, {pipeline_mode = #tpu.pipeline_mode<synchronous>, transform_indices = @transform_3, window_bounds = array<i64: 3, 128, 128>}, {pipeline_mode = #tpu.pipeline_mode<synchronous>, transform_indices = @transform_4, window_bounds = array<i64: 1, 128>}, {transform_indices = @transform_5, window_bounds = array<i64: 1, 16, 128>}]} {
    %c0 = arith.constant 0 : index
    %c0_0 = arith.constant 0 : index
    %c0_1 = arith.constant 0 : index
    %0 = vector.load %arg1[%c0, %c0_0, %c0_1] : memref<1x16x128xbf16, #tpu.memory_space<vmem>>, vector<1x16x128xbf16>
    %1 = vector.shape_cast %0 : vector<1x16x128xbf16> to vector<16x128xbf16>
    %cst = arith.constant 0.000000e+00 : bf16
    %2 = vector.broadcast %cst : bf16 to vector<1x128xbf16>
    %c0_2 = arith.constant 0 : index
    %c0_3 = arith.constant 0 : index
    %3 = vector.load %arg7[%c0_2, %c0_3] : memref<18x128xbf16, #tpu.memory_space<vmem>>, vector<1x128xbf16>
    tpu.vector_store %arg7[%c0_2, %c0_3], %2 {strides = array<i32>} : memref<18x128xbf16, #tpu.memory_space<vmem>>, vector<1x128xbf16>,
    %cst_4 = arith.constant 0.000000e+00 : bf16
    %4 = vector.broadcast %cst_4 : bf16 to vector<1x128xbf16>
    %c17 = arith.constant 17 : index
    %c0_5 = arith.constant 0 : index
    %5 = vector.load %arg7[%c17, %c0_5] : memref<18x128xbf16, #tpu.memory_space<vmem>>, vector<1x128xbf16>
    tpu.vector_store %arg7[%c17, %c0_5], %4 {strides = array<i32>} : memref<18x128xbf16, #tpu.memory_space<vmem>>, vector<1x128xbf16>,
    %c1 = arith.constant 1 : index
    %c0_6 = arith.constant 0 : index
    %6 = vector.load %arg7[%c1, %c0_6] : memref<18x128xbf16, #tpu.memory_space<vmem>>, vector<16x128xbf16>
    tpu.vector_store %arg7[%c1, %c0_6], %1 {strides = array<i32>} : memref<18x128xbf16, #tpu.memory_space<vmem>>, vector<16x128xbf16>,
    %c0_7 = arith.constant 0 : index
    %c0_8 = arith.constant 0 : index
    %7 = vector.load %arg7[%c0_7, %c0_8] : memref<18x128xbf16, #tpu.memory_space<vmem>>, vector<16x128xbf16>
    %c0_9 = arith.constant 0 : index
    %c0_10 = arith.constant 0 : index
    %c0_11 = arith.constant 0 : index
    %8 = vector.load %arg2[%c0_9, %c0_10, %c0_11] : memref<3x128x128xbf16, #tpu.memory_space<vmem>>, vector<1x128x128xbf16>
    %9 = vector.shape_cast %8 : vector<1x128x128xbf16> to vector<128x128xbf16>
    %cst_12 = arith.constant dense<0.000000e+00> : vector<16x128xf32>
    %10 = tpu.matmul %7, %9, %cst_12 {dimension_numbers = #tpu.dot_dimension_numbers<[1], [0], [0], [1], [0, 0, 1, 1], [], []>} : vector<16x128xbf16>, vector<128x128xbf16>, vector<16x128xf32> -> vector<16x128xf32>
    %c1_13 = arith.constant 1 : index
    %c0_14 = arith.constant 0 : index
    %11 = vector.load %arg7[%c1_13, %c0_14] : memref<18x128xbf16, #tpu.memory_space<vmem>>, vector<16x128xbf16>
    %c1_15 = arith.constant 1 : index
    %c0_16 = arith.constant 0 : index
    %c0_17 = arith.constant 0 : index
    %12 = vector.load %arg2[%c1_15, %c0_16, %c0_17] : memref<3x128x128xbf16, #tpu.memory_space<vmem>>, vector<1x128x128xbf16>
    %13 = vector.shape_cast %12 : vector<1x128x128xbf16> to vector<128x128xbf16>
    %cst_18 = arith.constant dense<0.000000e+00> : vector<16x128xf32>
    %14 = tpu.matmul %11, %13, %cst_18 {dimension_numbers = #tpu.dot_dimension_numbers<[1], [0], [0], [1], [0, 0, 1, 1], [], []>} : vector<16x128xbf16>, vector<128x128xbf16>, vector<16x128xf32> -> vector<16x128xf32>
    %15 = arith.addf %10, %14 : vector<16x128xf32>
    %c2 = arith.constant 2 : index
    %c0_19 = arith.constant 0 : index
    %16 = vector.load %arg7[%c2, %c0_19] : memref<18x128xbf16, #tpu.memory_space<vmem>>, vector<16x128xbf16>
    %c2_20 = arith.constant 2 : index
    %c0_21 = arith.constant 0 : index
    %c0_22 = arith.constant 0 : index
    %17 = vector.load %arg2[%c2_20, %c0_21, %c0_22] : memref<3x128x128xbf16, #tpu.memory_space<vmem>>, vector<1x128x128xbf16>
    %18 = vector.shape_cast %17 : vector<1x128x128xbf16> to vector<128x128xbf16>
    %cst_23 = arith.constant dense<0.000000e+00> : vector<16x128xf32>
    %19 = tpu.matmul %16, %18, %cst_23 {dimension_numbers = #tpu.dot_dimension_numbers<[1], [0], [0], [1], [0, 0, 1, 1], [], []>} : vector<16x128xbf16>, vector<128x128xbf16>, vector<16x128xf32> -> vector<16x128xf32>
    %20 = arith.addf %15, %19 : vector<16x128xf32>
    %c0_24 = arith.constant 0 : index
    %c0_25 = arith.constant 0 : index
    %21 = vector.load %arg3[%c0_24, %c0_25] : memref<1x128xf32, #tpu.memory_space<vmem>>, vector<1x128xf32>
    %22 = vector.broadcast %21 : vector<1x128xf32> to vector<16x128xf32>
    %23 = arith.addf %20, %22 : vector<16x128xf32>
    %cst_26 = arith.constant 0.000000e+00 : f32
    %24 = vector.broadcast %cst_26 : f32 to vector<16x128xf32>
    %25 = arith.maximumf %23, %24 : vector<16x128xf32>
    %cst_27 = arith.constant 0.000000e+00 : bf16
    %26 = vector.broadcast %cst_27 : bf16 to vector<1x128xbf16>
    %c0_28 = arith.constant 0 : index
    %c0_29 = arith.constant 0 : index
    %27 = vector.load %arg8[%c0_28, %c0_29] : memref<18x128xbf16, #tpu.memory_space<vmem>>, vector<1x128xbf16>
    tpu.vector_store %arg8[%c0_28, %c0_29], %26 {strides = array<i32>} : memref<18x128xbf16, #tpu.memory_space<vmem>>, vector<1x128xbf16>,
    %cst_30 = arith.constant 0.000000e+00 : bf16
    %28 = vector.broadcast %cst_30 : bf16 to vector<1x128xbf16>
    %c17_31 = arith.constant 17 : index
    %c0_32 = arith.constant 0 : index
    %29 = vector.load %arg8[%c17_31, %c0_32] : memref<18x128xbf16, #tpu.memory_space<vmem>>, vector<1x128xbf16>
    tpu.vector_store %arg8[%c17_31, %c0_32], %28 {strides = array<i32>} : memref<18x128xbf16, #tpu.memory_space<vmem>>, vector<1x128xbf16>,
    %30 = arith.truncf %25 : vector<16x128xf32> to vector<16x128xbf16>
    %c1_33 = arith.constant 1 : index
    %c0_34 = arith.constant 0 : index
    %31 = vector.load %arg8[%c1_33, %c0_34] : memref<18x128xbf16, #tpu.memory_space<vmem>>, vector<16x128xbf16>
    tpu.vector_store %arg8[%c1_33, %c0_34], %30 {strides = array<i32>} : memref<18x128xbf16, #tpu.memory_space<vmem>>, vector<16x128xbf16>,
    %c0_35 = arith.constant 0 : index
    %c0_36 = arith.constant 0 : index
    %32 = vector.load %arg8[%c0_35, %c0_36] : memref<18x128xbf16, #tpu.memory_space<vmem>>, vector<16x128xbf16>
    %c0_37 = arith.constant 0 : index
    %c0_38 = arith.constant 0 : index
    %c0_39 = arith.constant 0 : index
    %33 = vector.load %arg4[%c0_37, %c0_38, %c0_39] : memref<3x128x128xbf16, #tpu.memory_space<vmem>>, vector<1x128x128xbf16>
    %34 = vector.shape_cast %33 : vector<1x128x128xbf16> to vector<128x128xbf16>
    %cst_40 = arith.constant dense<0.000000e+00> : vector<16x128xf32>
    %35 = tpu.matmul %32, %34, %cst_40 {dimension_numbers = #tpu.dot_dimension_numbers<[1], [0], [0], [1], [0, 0, 1, 1], [], []>} : vector<16x128xbf16>, vector<128x128xbf16>, vector<16x128xf32> -> vector<16x128xf32>
    %c1_41 = arith.constant 1 : index
    %c0_42 = arith.constant 0 : index
    %36 = vector.load %arg8[%c1_41, %c0_42] : memref<18x128xbf16, #tpu.memory_space<vmem>>, vector<16x128xbf16>
    %c1_43 = arith.constant 1 : index
    %c0_44 = arith.constant 0 : index
    %c0_45 = arith.constant 0 : index
    %37 = vector.load %arg4[%c1_43, %c0_44, %c0_45] : memref<3x128x128xbf16, #tpu.memory_space<vmem>>, vector<1x128x128xbf16>
    %38 = vector.shape_cast %37 : vector<1x128x128xbf16> to vector<128x128xbf16>
    %cst_46 = arith.constant dense<0.000000e+00> : vector<16x128xf32>
    %39 = tpu.matmul %36, %38, %cst_46 {dimension_numbers = #tpu.dot_dimension_numbers<[1], [0], [0], [1], [0, 0, 1, 1], [], []>} : vector<16x128xbf16>, vector<128x128xbf16>, vector<16x128xf32> -> vector<16x128xf32>
    %40 = arith.addf %35, %39 : vector<16x128xf32>
    %c2_47 = arith.constant 2 : index
    %c0_48 = arith.constant 0 : index
    %41 = vector.load %arg8[%c2_47, %c0_48] : memref<18x128xbf16, #tpu.memory_space<vmem>>, vector<16x128xbf16>
    %c2_49 = arith.constant 2 : index
    %c0_50 = arith.constant 0 : index
    %c0_51 = arith.constant 0 : index
    %42 = vector.load %arg4[%c2_49, %c0_50, %c0_51] : memref<3x128x128xbf16, #tpu.memory_space<vmem>>, vector<1x128x128xbf16>
    %43 = vector.shape_cast %42 : vector<1x128x128xbf16> to vector<128x128xbf16>
    %cst_52 = arith.constant dense<0.000000e+00> : vector<16x128xf32>
    %44 = tpu.matmul %41, %43, %cst_52 {dimension_numbers = #tpu.dot_dimension_numbers<[1], [0], [0], [1], [0, 0, 1, 1], [], []>} : vector<16x128xbf16>, vector<128x128xbf16>, vector<16x128xf32> -> vector<16x128xf32>
    %45 = arith.addf %40, %44 : vector<16x128xf32>
    %c0_53 = arith.constant 0 : index
    %c0_54 = arith.constant 0 : index
    %46 = vector.load %arg5[%c0_53, %c0_54] : memref<1x128xf32, #tpu.memory_space<vmem>>, vector<1x128xf32>
    %47 = vector.broadcast %46 : vector<1x128xf32> to vector<16x128xf32>
    %48 = arith.addf %45, %47 : vector<16x128xf32>
    %49 = arith.extf %1 : vector<16x128xbf16> to vector<16x128xf32>
    %50 = arith.addf %48, %49 : vector<16x128xf32>
    %cst_55 = arith.constant 0.000000e+00 : f32
    %51 = vector.broadcast %cst_55 : f32 to vector<16x128xf32>
    %52 = arith.maximumf %50, %51 : vector<16x128xf32>
    %53 = arith.truncf %52 : vector<16x128xf32> to vector<16x128xbf16>
    %54 = vector.shape_cast %53 : vector<16x128xbf16> to vector<1x16x128xbf16>
    %c0_56 = arith.constant 0 : index
    %c0_57 = arith.constant 0 : index
    %c0_58 = arith.constant 0 : index
    %55 = vector.load %arg6[%c0_56, %c0_57, %c0_58] : memref<1x16x128xbf16, #tpu.memory_space<vmem>>, vector<1x16x128xbf16>
    tpu.vector_store %arg6[%c0_56, %c0_57, %c0_58], %54 {strides = array<i32>} : memref<1x16x128xbf16, #tpu.memory_space<vmem>>, vector<1x16x128xbf16>,
    return
  }
  func.func @transform_0(%arg0: i32) -> (i32, i32, i32) {
    %c0_i32 = arith.constant 0 : i32
    %c0_i32_0 = arith.constant 0 : i32
    %c0_i32_1 = arith.constant 0 : i32
    return %arg0, %c0_i32, %c0_i32_0 : i32, i32, i32
  }
  func.func @transform_1(%arg0: i32) -> (i32, i32, i32) {
    %c0_i32 = arith.constant 0 : i32
    %c0_i32_0 = arith.constant 0 : i32
    %c0_i32_1 = arith.constant 0 : i32
    %c0_i32_2 = arith.constant 0 : i32
    return %c0_i32, %c0_i32_0, %c0_i32_1 : i32, i32, i32
  }
  func.func @transform_2(%arg0: i32) -> (i32, i32) {
    %c0_i32 = arith.constant 0 : i32
    %c0_i32_0 = arith.constant 0 : i32
    %c0_i32_1 = arith.constant 0 : i32
    return %c0_i32, %c0_i32_0 : i32, i32
  }
  func.func @transform_3(%arg0: i32) -> (i32, i32, i32) {
    %c0_i32 = arith.constant 0 : i32
    %c0_i32_0 = arith.constant 0 : i32
    %c0_i32_1 = arith.constant 0 : i32
    %c0_i32_2 = arith.constant 0 : i32
    return %c0_i32, %c0_i32_0, %c0_i32_1 : i32, i32, i32
  }
  func.func @transform_4(%arg0: i32) -> (i32, i32) {
    %c0_i32 = arith.constant 0 : i32
    %c0_i32_0 = arith.constant 0 : i32
    %c0_i32_1 = arith.constant 0 : i32
    return %c0_i32, %c0_i32_0 : i32, i32
  }
  func.func @transform_5(%arg0: i32) -> (i32, i32, i32) {
    %c0_i32 = arith.constant 0 : i32
    %c0_i32_0 = arith.constant 0 : i32
    %c0_i32_1 = arith.constant 0 : i32
    return %arg0, %c0_i32, %c0_i32_0 : i32, i32, i32
  }
}

</mosaic_0001>

<bundles_post_ra>
// kernel: basic_block_pallas.1
= control target key start
LH: loop header
LB: loop body
LE: loop exit
PB: predicated region body
PF: predicated region fallthrough
CT: control target
= control target key end

     0   :  { %v1213_v0 = vmov 0.0   ;;  %vm1214_vm0 = vmmov 0   ;;  %vm23_vm1 = vcmask 1040384   ;;  %vm24_vm2 = vsmask.f32 256  ;;  %s1519_s1 = inlined_call_operand.vmem [shape: bf16[3,128,128], index: 1, kind: input, shape index: {}]   ;;  %s1520_s0 = inlined_call_operand.vmem [shape: bf16[1,16,128], index: 0, kind: input, shape index: {}]   ;;  %s1521_s3 = inlined_call_operand.vmem [shape: bf16[3,128,128], index: 3, kind: input, shape index: {}]   ;;  %s1522_s2 = inlined_call_operand.vmem [shape: f32[1,128], index: 2, kind: input, shape index: {}]   ;;  %s1523_s4 = inlined_call_operand.vmem [shape: f32[1,128], index: 4, kind: input, shape index: {}]   ;;  %s1524_s5 = inlined_call_operand.vmem [shape: bf16[1,16,128], index: 5, kind: output, shape index: {}]  }
   0x1   :  { %1037 = vmatprep.subr.bf16.mxu0 %v1213_v0  ;;  %1057 = vmatprep.subr.bf16.mxu1 %v1213_v0  ;;  %v1159_v1 = vld [vmem:[%s1519_s1 + $0x40] sm:$0xff]   ;;  %v1161_v3 = vld [vmem:[%s1519_s1 + $0x48] sm:$0xff]   ;;  %v1163_v5 = vld [vmem:[%s1519_s1 + $0x50] sm:$0xff]   ;;  %vm29_vm4 = vsmask.f32 7938  ;;  %vm56_vm7 = vcmask 1043456  }
   0x2   :  { %v1160_v2 = vld [vmem:[%s1519_s1] sm:$0xff]   ;;  %1053 = vmatprep.mubr.msk.bf16.mxu0 %vm1214_vm0, %v1213_v0  ;;  %1073 = vmatprep.mubr.msk.bf16.mxu1 %vm1214_vm0, %v1213_v0  ;;  %v1162_v4 = vld [vmem:[%s1519_s1 + $0x8] sm:$0xff]   ;;  %v1164_v6 = vld [vmem:[%s1519_s1 + $0x10] sm:$0xff]   ;;  %vm34_vm6 = vsmask.f32 4368  ;;  %vm323_vm11 = vcmask 1046528  }
   0x3   :  { %1038 = vmatpush3.bf16.msra.mxu0 %v1159_v1  ;;  %1058 = vmatpush3.bf16.msra.mxu1 %v1160_v2  ;;  %v1165_v7 = vld [vmem:[%s1519_s1 + $0x58] sm:$0xff]   ;;  %v1167_v9 = vld [vmem:[%s1519_s1 + $0x60] sm:$0xff]   ;;  %vm1300_vm3 = vmand %vm23_vm1, %vm24_vm2  ;;  %vm109_vm10 = vsmask.f32 7424 }
   0x4   :  { %1039 = vmatprep.subr.bf16.mxu0 %v1213_v0  ;;  %1059 = vmatprep.subr.bf16.mxu1 %v1213_v0  ;;  %v1166_v8 = vld [vmem:[%s1519_s1 + $0x18] sm:$0xff]   ;;  %v1168_v10 = vld [vmem:[%s1519_s1 + $0x20] sm:$0xff]   ;;  %vm1305_vm5 = vmand %vm23_vm1, %vm29_vm4 }
   0x5   :  { %v1292_v11 = vld [vmem:[%s1520_s0] sm:$0xf]  ;;  %v1297_v12 = vld [vmem:[%s1520_s0 + $0x4] sm:$0xf]  ;;  %v31_v16 = vld [vmem:[#allocation2 + $0x8] sm:$0x1] }
   0x6   :  { %v26_v14 = vld [vmem:[#allocation2] sm:$0x1]  ;;  %v1169_v17 = vld [vmem:[%s1519_s1 + $0x68] sm:$0xff]   ;;  %v32_v19 = vsel %vm1305_vm5, 0, %v31_v16  ;;  %v37_v20 = vshrl.u32 %v1292_v11, 16  ;;  %v40_v22 = vshll.u32 %v1292_v11, 16  ;;  %vm1330_vm8 = vmor %vm24_vm2, %vm34_vm6 }
   0x7   :  { %1040 = vmatpush3.bf16.msra.mxu0 %v1161_v3  ;;  %1060 = vmatpush3.bf16.msra.mxu1 %v1162_v4  ;;  %v27_v18 = vsel %vm1300_vm3, 0, %v26_v14  ;;  %v1170_v21 = vld [vmem:[%s1519_s1 + $0x28] sm:$0xff]   ;;  %33 = vst [vmem:[#allocation2 + $0x8] sm:$0x1] %v32_v19  ;;  %v45_v23 = vshrl.u32 %v1297_v12, 16  ;;  %v48_v24 = vshll.u32 %v1297_v12, 16  ;;  %vm1340_vm9 = vmand %vm56_vm7, %vm29_vm4 }
   0x8   :  { %1041 = vmatprep.subr.bf16.mxu0 %v1213_v0  ;;  %1061 = vmatprep.subr.bf16.mxu1 %v1213_v0  ;;  %28 = vst [vmem:[#allocation2] sm:$0x1] %v27_v18  ;;  %v39_v25 = vrot.slane %v37_v20, 7  ;;  %v1171_v26 = vld [vmem:[%s1519_s1 + $0x70] sm:$0xff]   ;;  %v1173_v36 = vld [vmem:[%s1519_s1 + $0x78] sm:$0xff]   ;;  %v1177_v52 = vld [vmem:[%s1519_s1 + $0x80] sm:$0xff]  }
   0x9   :  { %v47_v27 = vrot.slane %v45_v23, 7  ;;  %v1172_v30 = vld [vmem:[%s1519_s1 + $0x30] sm:$0xff]   ;;  %v1174_v39 = vld [vmem:[%s1519_s1 + $0x38] sm:$0xff]   ;;  %v1178_v54 = vld [vmem:[%s1519_s1 + $0x88] sm:$0xff]  }
   0xa   :  { %v43_v29 = vrot.slane %v39_v25, 4  ;;  %v42_v31 = vor.u32 %v40_v22, %v39_v25  ;;  %v1179_v55 = vld [vmem:[%s1519_s1 + $0x90] sm:$0xff]   ;;  %v1180_v56 = vld [vmem:[%s1519_s1 + $0x98] sm:$0xff]   ;;  %v1181_v57 = vld [vmem:[%s1519_s1 + $0xa0] sm:$0xff]  }
   0xb   :  { %1042 = vmatpush3.bf16.msra.mxu0 %v1163_v5  ;;  %1062 = vmatpush3.bf16.msra.mxu1 %v1164_v6  ;;  %v50_v32 = vor.u32 %v48_v24, %v47_v27  ;;  %v52_v33 = vrot.slane %v47_v27, 4  ;;  %v1182_v58 = vld [vmem:[%s1519_s1 + $0xa8] sm:$0xff]   ;;  %v1183_v60 = vld [vmem:[%s1519_s1 + $0xb0] sm:$0xff]   ;;  %v1184_v62 = vld [vmem:[%s1519_s1 + $0xb8] sm:$0xff]  }
   0xc   :  { %1043 = vmatprep.subr.bf16.mxu0 %v1213_v0  ;;  %1063 = vmatprep.subr.bf16.mxu1 %v1213_v0  ;;  %v1186_v3 = vld [vmem:[%s1521_s3] sm:$0xff]   ;;  %v1187_v4 = vld [vmem:[%s1521_s3 + $0x8] sm:$0xff]   ;;  %v1189_v6 = vld [vmem:[%s1521_s3 + $0x10] sm:$0xff]  }
   0xd   :  { %v51_v35 = vsel %vm1330_vm8, %v43_v29, %v50_v32  ;;  %v1188_v5 = vld [vmem:[%s1521_s3 + $0x40] sm:$0xff]   ;;  %v1191_v14 = vld [vmem:[%s1521_s3 + $0x18] sm:$0xff]   ;;  %v1195_v19 = vld [vmem:[%s1521_s3 + $0x28] sm:$0xff]  }
   0xe   :  { %61 = vst [vmem:[#allocation2 + $0x4] sm:$0xf] %v51_v35  ;;  %v62_v38 = vld [vmem:[#allocation2 + $0x8] sm:$0x1]  ;;  %v1193_v18 = vld [vmem:[%s1521_s3 + $0x20] sm:$0xff]   ;;  %v1194_v15 = vld [vmem:[%s1521_s3 + $0x58] sm:$0xff]  }
   0xf   :  { %1044 = vmatpush3.bf16.msra.mxu0 %v1165_v7  ;;  %1064 = vmatpush3.bf16.msra.mxu1 %v1166_v8  ;;  %v58_v37 = vld [vmem:[#allocation2] sm:$0xf]  ;;  %v63_v41 = vsel %vm1300_vm3, %v52_v33, %v62_v38  ;;  %v430_v7 = vld [vmem:[#allocation3] sm:$0x1]  ;;  %v1199_v23 = vld [vmem:[%s1521_s3 + $0x38] sm:$0xff]  }
  0x10   :  { %1045 = vmatprep.subr.bf16.mxu0 %v1213_v0  ;;  %1065 = vmatprep.subr.bf16.mxu1 %v1213_v0  ;;  %v59_v40 = vsel %vm1340_vm9, %v42_v31, %v58_v37  ;;  %64 = vst [vmem:[#allocation2 + $0x8] sm:$0x1] %v63_v41  ;;  %v1190_v8 = vld [vmem:[%s1521_s3 + $0x48] sm:$0xff]   ;;  %v1196_v20 = vld [vmem:[%s1521_s3 + $0x60] sm:$0xff]   ;;  %v1200_v24 = vld [vmem:[%s1521_s3 + $0x70] sm:$0xff]  }
  0x11   :  { %60 = vst [vmem:[#allocation2] sm:$0xf] %v59_v40  ;;  %v1198_v22 = vld [vmem:[%s1521_s3 + $0x68] sm:$0xff]   ;;  %v1202_v25 = vld [vmem:[%s1521_s3 + $0x78] sm:$0xff]   ;;  %v1204_v28 = vld [vmem:[%s1521_s3 + $0x80] sm:$0xff]  }
  0x13   :  { %1046 = vmatpush3.bf16.msra.mxu0 %v1167_v9  ;;  %1066 = vmatpush3.bf16.msra.mxu1 %v1168_v10  ;;  %v431_v9 = vsel %vm1300_vm3, 0, %v430_v7  ;;  %v433_v10 = vld [vmem:[#allocation3 + $0x8] sm:$0x1] }
  0x14   :  { %1047 = vmatprep.subr.bf16.mxu0 %v1213_v0  ;;  %1067 = vmatprep.subr.bf16.mxu1 %v1213_v0  ;;  %432 = vst [vmem:[#allocation3] sm:$0x1] %v431_v9  ;;  %v434_v16 = vsel %vm1305_vm5, 0, %v433_v10 }
  0x15   :  { %v66_v42 = vld [vmem:[#allocation2 + $0x4] sm:$0xf]  ;;  %435 = vst [vmem:[#allocation3 + $0x8] sm:$0x1] %v434_v16  ;;  %v1205_v16 = vld [vmem:[%s1521_s3 + $0x88] sm:$0xff]  }
  0x17   :  { %1048 = vmatpush3.bf16.msra.mxu0 %v1169_v17  ;;  %1068 = vmatpush3.bf16.msra.mxu1 %v1170_v21  ;;  %v1176_v45 = vld [vmem:[#allocation2 + $0x8] ss:$0 sps:$4 sm:$0x11]   ;;  %v1192_v17 = vld [vmem:[%s1521_s3 + $0x50] sm:$0xff]  }
  0x18   :  { %1049 = vmatprep.subr.bf16.mxu0 %v1213_v0  ;;  %1069 = vmatprep.subr.bf16.mxu1 %v1213_v0  ;;  %v65_v43 = vld [vmem:[#allocation2] sm:$0xf]  ;;  %v118_v48 = vshll.u32 %v1176_v45, 16  ;;  %v325_v1 = vrot.slane %v1176_v45, 1  ;;  %v1197_v21 = vld [vmem:[%s1521_s3 + $0x30] sm:$0xff]  }
  0x19   :  { %v866_v44 = vcombine.low %v65_v43, %v66_v42  ;;  %v302_v59 = vld [vmem:[#allocation2] sm:$0xe] }
  0x1a   :  { %v120_v50 = vrot.slane %v118_v48, 1  ;;  %v900_v61 = vcombine.low %v302_v59, %v66_v42 }
  0x1b   :  { %1050 = vmatpush3.bf16.msra.mxu0 %v1171_v26  ;;  %1070 = vmatpush3.bf16.msra.mxu1 %v1172_v30  ;;  %v111_v46 = vshrl.u32 %v866_v44, 16  ;;  %v113_v47 = vshll.u32 %v866_v44, 16 }
  0x1c   :  { %1051 = vmatprep.subr.bf16.mxu0 %v1213_v0  ;;  %1071 = vmatprep.subr.bf16.mxu1 %v1213_v0  ;;  %v324_v63 = vrot.slane %v900_v61, 1  ;;  %v466_v59 = vld [vmem:[#allocation3 + $0x8] sm:$0x1] }
  0x1d   :  { %v115_v49 = vrot.slane %v113_v47, 1 }
  0x1e   :  { %v326_v2 = vsel %vm323_vm11, %v324_v63, %v325_v1 }
  0x1f   :  { %1052 = vmatpush3.bf16.msra.mxu0 %v1173_v36  ;;  %1072 = vmatpush3.bf16.msra.mxu1 %v1174_v39  ;;  %v116_v51 = vor.u32 %v115_v49, %v111_v46  ;;  %v909_v39 = vld [vmem:[%s1522_s2] ss:$0 sm:$0xff] }
  0x20   :  { %1077 = vmatprep.subr.bf16.mxu0 %v1213_v0  ;;  %1097 = vmatprep.subr.bf16.mxu1 %v1213_v0 }
  0x21   :  { %v121_v53 = vsel %vm109_vm10, %v116_v51, %v120_v50 }
  0x22   :  { %1074 = vmatmul.mubr.bf16.vlgmr.msra.gmra.mrb[0].mxu1 %v866_v44  ;;  %1054 = vmatmul.mubr.bf16.vlgmr.msra.gmra.mrb[0].mxu0 %v121_v53 }
  0x23   :  { %1113 = vmatprep.mubr.msk.bf16.mxu1 %vm1214_vm0, %v1213_v0  ;;  %1078 = vmatpush3.bf16.msra.mxu0 %v1177_v52 }
  0x24   :  { %1093 = vmatprep.mubr.msk.bf16.mxu0 %vm1214_vm0, %v1213_v0  ;;  %1079 = vmatprep.subr.bf16.mxu0 %v1213_v0 }
  0x25   :  { %1098 = vmatpush3.bf16.msra.mxu1 %v1188_v5 }
  0x26   :  { %1099 = vmatprep.subr.bf16.mxu1 %v1213_v0 }
  0x27   :  { %1080 = vmatpush3.bf16.msra.mxu0 %v1178_v54 }
  0x28   :  { %1081 = vmatprep.subr.bf16.mxu0 %v1213_v0 }
  0x29   :  { %1100 = vmatpush3.bf16.msra.mxu1 %v1190_v8 }
  0x2a   :  { %1101 = vmatprep.subr.bf16.mxu1 %v1213_v0 }
  0x2b   :  { %1082 = vmatpush3.bf16.msra.mxu0 %v1179_v55  ;;  %v462_v55 = vld [vmem:[#allocation3] sm:$0xf] }
  0x2c   :  { %1083 = vmatprep.subr.bf16.mxu0 %v1213_v0 }
  0x2d   :  { %1102 = vmatpush3.bf16.msra.mxu1 %v1192_v17  ;;  %v1206_v17 = vld [vmem:[%s1521_s3 + $0x90] sm:$0xff]  }
  0x2e   :  { %1103 = vmatprep.subr.bf16.mxu1 %v1213_v0 }
  0x2f   :  { %1084 = vmatpush3.bf16.msra.mxu0 %v1180_v56 }
  0x30   :  { %1085 = vmatprep.subr.bf16.mxu0 %v1213_v0 }
  0x31   :  { %1104 = vmatpush3.bf16.msra.mxu1 %v1194_v15  ;;  %v1208_v15 = vld [vmem:[%s1521_s3 + $0xa0] sm:$0xff]  }
  0x32   :  { %1105 = vmatprep.subr.bf16.mxu1 %v1213_v0 }
  0x33   :  { %1086 = vmatpush3.bf16.msra.mxu0 %v1181_v57 }
  0x34   :  { %1087 = vmatprep.subr.bf16.mxu0 %v1213_v0 }
  0x35   :  { %1106 = vmatpush3.bf16.msra.mxu1 %v1196_v20  ;;  %v1210_v20 = vld [vmem:[%s1521_s3 + $0xb0] sm:$0xff]  }
  0x36   :  { %1107 = vmatprep.subr.bf16.mxu1 %v1213_v0 }
  0x37   :  { %1088 = vmatpush3.bf16.msra.mxu0 %v1182_v58 }
  0x38   :  { %1089 = vmatprep.subr.bf16.mxu0 %v1213_v0 }
  0x39   :  { %1108 = vmatpush3.bf16.msra.mxu1 %v1198_v22 }
  0x3a   :  { %1109 = vmatprep.subr.bf16.mxu1 %v1213_v0 }
  0x3b   :  { %1090 = vmatpush3.bf16.msra.mxu0 %v1183_v60 }
  0x3c   :  { %1091 = vmatprep.subr.bf16.mxu0 %v1213_v0 }
  0x3d   :  { %1110 = vmatpush3.bf16.msra.mxu1 %v1200_v24 }
  0x3e   :  { %1111 = vmatprep.subr.bf16.mxu1 %v1213_v0 }
  0x3f   :  { %1092 = vmatpush3.bf16.msra.mxu0 %v1184_v62 }
  0x40   :  { %1117 = vmatprep.subr.bf16.mxu0 %v1213_v0 }
  0x41   :  { %1112 = vmatpush3.bf16.msra.mxu1 %v1202_v25 }
  0x42   :  { %1094 = vmatmul.mubr.bf16.vlgmr.msra.gmra.mrb[4].mxu0 %v326_v2  ;;  %1137 = vmatprep.subr.bf16.mxu1 %v1213_v0 }
  0x43   :  { %1133 = vmatprep.mubr.msk.bf16.mxu0 %vm1214_vm0, %v1213_v0  ;;  %1118 = vmatpush3.bf16.msra.mxu0 %v1186_v3 }
  0x44   :  { %1119 = vmatprep.subr.bf16.mxu0 %v1213_v0 }
  0x47   :  { %1120 = vmatpush3.bf16.msra.mxu0 %v1187_v4 }
  0x48   :  { %1121 = vmatprep.subr.bf16.mxu0 %v1213_v0 }
  0x4b   :  { %1122 = vmatpush3.bf16.msra.mxu0 %v1189_v6 }
  0x4c   :  { %1123 = vmatprep.subr.bf16.mxu0 %v1213_v0 }
  0x4f   :  { %1124 = vmatpush3.bf16.msra.mxu0 %v1191_v14 }
  0x50   :  { %1125 = vmatprep.subr.bf16.mxu0 %v1213_v0 }
  0x53   :  { %1126 = vmatpush3.bf16.msra.mxu0 %v1193_v18  ;;  %v1207_v18 = vld [vmem:[%s1521_s3 + $0x98] sm:$0xff]  }
  0x54   :  { %1127 = vmatprep.subr.bf16.mxu0 %v1213_v0 }
  0x57   :  { %1128 = vmatpush3.bf16.msra.mxu0 %v1195_v19  ;;  %v1209_v19 = vld [vmem:[%s1521_s3 + $0xa8] sm:$0xff]  }
  0x58   :  { %1129 = vmatprep.subr.bf16.mxu0 %v1213_v0 }
  0x5b   :  { %1130 = vmatpush3.bf16.msra.mxu0 %v1197_v21 }
  0x5c   :  { %1131 = vmatprep.subr.bf16.mxu0 %v1213_v0 }
  0x5f   :  { %1132 = vmatpush3.bf16.msra.mxu0 %v1199_v23  ;;  %v1211_v23 = vld [vmem:[%s1521_s3 + $0xb8] sm:$0xff]  }
  0xf5   :  { %v295_v26 = vpop.f32.mrb[0].mxu1  ;;  %v205_v31 = vpop.f32.mrb[0].mxu0 }
  0xf6   :  { %v1075_v27 = vpop.f32.mrb[1].mxu1  ;;  %v296_v32 = vadd.f32 %v295_v26, %v205_v31  ;;  %v1055_v33 = vpop.f32.mrb[1].mxu0 }
  0xf7   :  { %v298_v29 = vpop.f32.mrb[2].mxu1  ;;  %v208_v35 = vpop.f32.mrb[2].mxu0 }
  0xf8   :  { %v1076_v30 = vpop.f32.mrb[3].mxu1  ;;  %v299_v36 = vadd.f32 %v298_v29, %v208_v35  ;;  %v1056_v37 = vpop.f32.mrb[3].mxu0 }
 0x115   :  { %v410_v38 = vpop.f32.mrb[4].mxu0 }
 0x116   :  { %v417_v40 = vadd.f32 %v410_v38, %v296_v32  ;;  %v1095_v41 = vpop.f32.mrb[5].mxu0 }
 0x117   :  { %v413_v42 = vpop.f32.mrb[6].mxu0  ;;  %v830_v41 = vunpack.c.l.bf16 %v1292_v11 }
 0x118   :  { %v426_v43 = vadd.f32 %v909_v39, %v417_v40  ;;  %v418_v44 = vadd.f32 %v413_v42, %v299_v36  ;;  %v1096_v45 = vpop.f32.mrb[7].mxu0 }
 0x11a   :  { %v428_v46 = vmax.f32 %v426_v43, 0.0  ;;  %v427_v47 = vadd.f32 %v909_v39, %v418_v44 }
 0x11c   :  { %v974_v48 = vpack.c.bf16 %v428_v46, %v428_v46  ;;  %v429_v49 = vmax.f32 %v427_v47, 0.0  ;;  %v831_v46 = vunpack.c.l.bf16 %v1297_v12 }
 0x11e   :  { %v443_v50 = vshrl.u32 %v974_v48, 16  ;;  %v975_v51 = vpack.c.bf16 %v429_v49, %v429_v49  ;;  %v446_v53 = vshll.u32 %v974_v48, 16 }
 0x120   :  { %v445_v52 = vrot.slane %v443_v50, 7  ;;  %v451_v54 = vshrl.u32 %v975_v51, 16  ;;  %v454_v58 = vshll.u32 %v975_v51, 16 }
 0x122   :  { %v448_v56 = vor.u32 %v446_v53, %v445_v52  ;;  %v453_v57 = vrot.slane %v451_v54, 7  ;;  %v449_v60 = vrot.slane %v445_v52, 4 }
 0x124   :  { %v463_v61 = vsel %vm1340_vm9, %v448_v56, %v462_v55  ;;  %v456_v62 = vor.u32 %v454_v58, %v453_v57  ;;  %v458_v63 = vrot.slane %v453_v57, 4 }
 0x125   :  { %464 = vst [vmem:[#allocation3] sm:$0xf] %v463_v61 }
 0x126   :  { %v457_v1 = vsel %vm1330_vm8, %v449_v60, %v456_v62  ;;  %v467_v2 = vsel %vm1300_vm3, %v458_v63, %v466_v59 }
 0x127   :  { %465 = vst [vmem:[#allocation3 + $0x4] sm:$0xf] %v457_v1  ;;  %468 = vst [vmem:[#allocation3 + $0x8] sm:$0x1] %v467_v2 }
 0x12c   :  { %v469_v3 = vld [vmem:[#allocation3] sm:$0xf] }
 0x12d   :  { %v705_v21 = vld [vmem:[#allocation3] sm:$0xe] }
 0x12e   :  { %v470_v4 = vld [vmem:[#allocation3 + $0x4] sm:$0xf]  ;;  %v1203_v6 = vld [vmem:[#allocation3 + $0x8] ss:$0 sps:$4 sm:$0x11]  }
 0x12f   :  { %v928_v5 = vcombine.low %v469_v3, %v470_v4  ;;  %v521_v8 = vshll.u32 %v1203_v6, 16  ;;  %v962_v22 = vcombine.low %v705_v21, %v470_v4  ;;  %v727_v25 = vrot.slane %v1203_v6, 1 }
 0x131   :  { %1134 = vmatmul.mubr.bf16.vlgmr.msra.gmra.mrb[8].mxu0 %v928_v5  ;;  %v516_v7 = vshll.u32 %v928_v5, 16  ;;  %v514_v34 = vshrl.u32 %v928_v5, 16  ;;  %v523_v14 = vrot.slane %v521_v8, 1  ;;  %v726_v24 = vrot.slane %v962_v22, 1 }
 0x133   :  { %v518_v9 = vrot.slane %v516_v7, 1  ;;  %v728_v26 = vsel %vm323_vm11, %v726_v24, %v727_v25 }
 0x135   :  { %v519_v10 = vor.u32 %v518_v9, %v514_v34 }
 0x137   :  { %v524_v13 = vsel %vm109_vm10, %v519_v10, %v523_v14 }
 0x138   :  { %1114 = vmatmul.mubr.bf16.vlgmr.msra.gmra.mrb[4].mxu1 %v524_v13 }
 0x139   :  { %1138 = vmatpush3.bf16.msra.mxu1 %v1204_v28  ;;  %1153 = vmatprep.mubr.msk.bf16.mxu1 %vm1214_vm0, %v1213_v0 }
 0x13a   :  { %1139 = vmatprep.subr.bf16.mxu1 %v1213_v0 }
 0x13d   :  { %1140 = vmatpush3.bf16.msra.mxu1 %v1205_v16 }
 0x13e   :  { %1141 = vmatprep.subr.bf16.mxu1 %v1213_v0 }
 0x141   :  { %1142 = vmatpush3.bf16.msra.mxu1 %v1206_v17 }
 0x142   :  { %1143 = vmatprep.subr.bf16.mxu1 %v1213_v0 }
 0x145   :  { %1144 = vmatpush3.bf16.msra.mxu1 %v1207_v18 }
 0x146   :  { %1145 = vmatprep.subr.bf16.mxu1 %v1213_v0 }
 0x149   :  { %1146 = vmatpush3.bf16.msra.mxu1 %v1208_v15 }
 0x14a   :  { %1147 = vmatprep.subr.bf16.mxu1 %v1213_v0 }
 0x14d   :  { %1148 = vmatpush3.bf16.msra.mxu1 %v1209_v19 }
 0x14e   :  { %1149 = vmatprep.subr.bf16.mxu1 %v1213_v0 }
 0x151   :  { %1150 = vmatpush3.bf16.msra.mxu1 %v1210_v20 }
 0x152   :  { %1151 = vmatprep.subr.bf16.mxu1 %v1213_v0  ;;  %v971_v0 = vld [vmem:[%s1523_s4] ss:$0 sm:$0xff] }
 0x155   :  { %1152 = vmatpush3.bf16.msra.mxu1 %v1211_v23 }
 0x158   :  { %1154 = vmatmul.mubr.bf16.vlgmr.msra.gmra.mrb[8].mxu1 %v728_v26 }
 0x204   :  { %v698_v27 = vpop.f32.mrb[8].mxu0 }
 0x205   :  { %v1135_v29 = vpop.f32.mrb[9].mxu0 }
 0x206   :  { %v701_v30 = vpop.f32.mrb[10].mxu0 }
 0x207   :  { %v1136_v31 = vpop.f32.mrb[11].mxu0 }
 0x20b   :  { %v608_v32 = vpop.f32.mrb[4].mxu1 }
 0x20c   :  { %v699_v33 = vadd.f32 %v698_v27, %v608_v32  ;;  %v1115_v35 = vpop.f32.mrb[5].mxu1 }
 0x20d   :  { %v611_v36 = vpop.f32.mrb[6].mxu1 }
 0x20e   :  { %v702_v37 = vadd.f32 %v701_v30, %v611_v36  ;;  %v1116_v38 = vpop.f32.mrb[7].mxu1 }
 0x22b   :  { %v812_v39 = vpop.f32.mrb[8].mxu1 }
 0x22c   :  { %v819_v40 = vadd.f32 %v812_v39, %v699_v33  ;;  %v1155_v42 = vpop.f32.mrb[9].mxu1 }
 0x22d   :  { %v815_v43 = vpop.f32.mrb[10].mxu1 }
 0x22e   :  { %v828_v44 = vadd.f32 %v971_v0, %v819_v40  ;;  %v820_v45 = vadd.f32 %v815_v43, %v702_v37  ;;  %v1156_v47 = vpop.f32.mrb[11].mxu1 }
 0x230   :  { %v832_v48 = vadd.f32 %v830_v41, %v828_v44  ;;  %v829_v49 = vadd.f32 %v971_v0, %v820_v45 }
 0x232   :  { %v833_v50 = vadd.f32 %v831_v46, %v829_v49  ;;  %v834_v51 = vmax.f32 %v832_v48, 0.0 }
 0x234   :  { %v835_v52 = vmax.f32 %v833_v50, 0.0 }
 0x236   :  { %v981_v53 = vpack.c.bf16 %v835_v52, %v834_v51 }
 0x238   :  { %982 = vst [vmem:[%s1524_s5] sm:$0xff] %v981_v53  }

</bundles_post_ra>
